<compile_context>
chip_gen: v6e
topology: v6e:2x2x1
jax: 0.10.0
libtpu: 0.0.40
codegen_flags: <defaults>
</compile_context>

<pallas_src>
from functools import partial

import jax
import jax.numpy as jnp
from jax.experimental import pallas as pl
from jax.experimental.pallas import tpu as pltpu


def mhsa_kernel(x_q_ref, x_kv_ref, w_q_ref, b_q_ref, w_kv_ref, b_kv_ref, o_ref,
                *, num_heads):
    tq, E = x_q_ref.shape
    skv = x_kv_ref.shape[0]
    D = E // num_heads
    scale = 1.0 / (D ** 0.5)                      # 1 / sqrt(E / H), compile-time

    # ---- Projections: bf16 MXU operands, f32 accumulation --------------------
    xq = x_q_ref[...].astype(jnp.bfloat16)                          # (tq, E)
    q = jnp.dot(xq, w_q_ref[...],
                preferred_element_type=jnp.float32) + b_q_ref[...]  # (tq, E) f32

    xkv = x_kv_ref[...].astype(jnp.bfloat16)                        # (skv, E)
    kv = jnp.dot(xkv, w_kv_ref[...],
                 preferred_element_type=jnp.float32) + b_kv_ref[...]  # (skv, 2E)

    # ---- Split heads: (seq, E) -> (H, seq, D) --------------------------------
    # PyTorch's view(S, H, D) makes head h the contiguous columns [h*D,(h+1)*D).
    qh = jnp.transpose(q.reshape(tq, num_heads, D).astype(jnp.bfloat16),
                       (1, 0, 2))                                    # (H, tq, D)
    kh = jnp.transpose(kv[:, :E].reshape(skv, num_heads, D).astype(jnp.bfloat16),
                       (1, 0, 2))                                    # (H, skv, D)
    vh = jnp.transpose(kv[:, E:].reshape(skv, num_heads, D).astype(jnp.bfloat16),
                       (1, 0, 2))                                    # (H, skv, D)

    # ---- Attention, batched over heads (two contractions total) --------------
    s = jnp.einsum("hqd,hkd->hqk", qh, kh,
                   preferred_element_type=jnp.float32) * scale      # (H, tq, skv) f32
    s = s - jnp.max(s, axis=-1, keepdims=True)                      # stable softmax (f32)
    p = jnp.exp(s)
    # EUP approx reciprocal (~1e-3 rel err) instead of an exact VPU divide.
    p = p * pl.reciprocal(jnp.sum(p, axis=-1, keepdims=True), approx=True)

    o = jnp.einsum("hqk,hkd->hqd", p.astype(jnp.bfloat16), vh,
                   preferred_element_type=jnp.float32)              # (H, tq, D) f32

    # Back to (tq, E) with heads contiguous along E, one lane-dense store.
    out = jnp.transpose(o, (1, 0, 2)).reshape(tq, E)
    o_ref[...] = out.astype(o_ref.dtype)


def pack_mhsa_params(wq, bq, wk, bk, wv, bv):
    """One-time parameter packing (hoisted out of the per-call path).

    PyTorch Linear weights are (out, in); transpose to (in, out), fuse K/V into
    a single (E, 2E) operand, and keep the matmul operands in bf16 (MXU-native
    on v6e/v7x).  Biases stay f32 (added after f32 accumulation).
    """
    E = wq.shape[0]
    w_q = wq.T.astype(jnp.bfloat16)                                     # (E, E)
    w_kv = jnp.concatenate([wk.T, wv.T], axis=1).astype(jnp.bfloat16)   # (E, 2E)
    b_q = bq.reshape(1, E).astype(jnp.float32)                          # (1, E)
    b_kv = jnp.concatenate([bk, bv]).reshape(1, 2 * E).astype(jnp.float32)  # (1, 2E)
    return w_q, b_q, w_kv, b_kv


def multihead_self_attention(x, w_q, b_q, w_kv, b_kv, *, num_heads, tq=None):
    S, E = x.shape
    assert E % num_heads == 0
    if tq is None:
        tq = min(S, 128)
    assert S % tq == 0
    n_q = S // tq

    return pl.pallas_call(
        partial(mhsa_kernel, num_heads=num_heads),
        out_shape=jax.ShapeDtypeStruct((S, E), x.dtype),
        grid=(n_q,),
        in_specs=[
            pl.BlockSpec((tq, E), lambda i: (i, 0)),       # query tile of x
            pl.BlockSpec((S, E), lambda i: (0, 0)),        # full x for K/V
            pl.BlockSpec((E, E), lambda i: (0, 0)),        # W_q (resident)
            pl.BlockSpec((1, E), lambda i: (0, 0)),        # b_q
            pl.BlockSpec((E, 2 * E), lambda i: (0, 0)),    # W_kv (resident)
            pl.BlockSpec((1, 2 * E), lambda i: (0, 0)),    # b_kv
        ],
        out_specs=pl.BlockSpec((tq, E), lambda i: (i, 0)),
        compiler_params=pltpu.CompilerParams(
            dimension_semantics=("parallel",),             # megacore on v7x
        ),
    )(x, x, w_q, b_q, w_kv, b_kv)


def reference(x, wq, bq, wk, bk, wv, bv, *, num_heads):
    """Pure-JAX f32 mirror of the PyTorch forward, for verification."""
    S, E = x.shape
    D = E // num_heads
    q = (x @ wq.T + bq).reshape(S, num_heads, D).transpose(1, 0, 2)   # (H,S,D)
    k = (x @ wk.T + bk).reshape(S, num_heads, D).transpose(1, 2, 0)   # (H,D,S)
    v = (x @ wv.T + bv).reshape(S, num_heads, D).transpose(1, 0, 2)   # (H,S,D)
    qk = jax.nn.softmax(jnp.einsum("hsd,hdt->hst", q, k) / jnp.sqrt(D * 1.0), axis=-1)
    return jnp.einsum("hst,htd->hsd", qk, v).transpose(1, 0, 2).reshape(S, E)


if __name__ == "__main__":
    S, E, H = 8, 32, 8
    key = jax.random.PRNGKey(0)
    kx, kq, kk, kv, kbq, kbk, kbv = jax.random.split(key, 7)

    bound = 1.0 / (E ** 0.5)  # PyTorch nn.Linear default init range
    x = jax.random.normal(kx, (S, E), dtype=jnp.float32)
    wq = jax.random.uniform(kq, (E, E), jnp.float32, -bound, bound)
    wk = jax.random.uniform(kk, (E, E), jnp.float32, -bound, bound)
    wv = jax.random.uniform(kv, (E, E), jnp.float32, -bound, bound)
    bq = jax.random.uniform(kbq, (E,), jnp.float32, -bound, bound)
    bk = jax.random.uniform(kbk, (E,), jnp.float32, -bound, bound)
    bv = jax.random.uniform(kbv, (E,), jnp.float32, -bound, bound)

    # Pack once (not per call): transposes, K/V fuse, bf16 cast.
    w_q, b_q, w_kv, b_kv = pack_mhsa_params(wq, bq, wk, bk, wv, bv)

    out = multihead_self_attention(x, w_q, b_q, w_kv, b_kv, num_heads=H)
    out = jax.block_until_ready(out)

    ref = reference(x, wq, bq, wk, bk, wv, bv, num_heads=H)
    assert out.shape == (S, E)
    # Tolerance loosened vs. f32 reference: bf16 matmul operands +
    # approx-reciprocal softmax (measured error is O(1e-3) at these scales).
    assert jnp.allclose(out, ref, atol=2e-2, rtol=2e-2)

    print("KERNEL_OK")
</pallas_src>

<mosaic_0001>
module attributes {stable_mosaic.version = 11 : i64} {
  func.func @mhsa_kernel(%arg0: i32, %arg1: memref<8x32xf32, #tpu.memory_space<vmem>>, %arg2: memref<8x32xf32, #tpu.memory_space<vmem>>, %arg3: memref<32x32xbf16, #tpu.memory_space<vmem>>, %arg4: memref<1x32xf32, #tpu.memory_space<vmem>>, %arg5: memref<32x64xbf16, #tpu.memory_space<vmem>>, %arg6: memref<1x64xf32, #tpu.memory_space<vmem>>, %arg7: memref<8x32xf32, #tpu.memory_space<vmem>>) attributes {dimension_semantics = [#tpu.dimension_semantics<parallel>], iteration_bounds = array<i64: 1>, scalar_prefetch = 0 : i64, scratch_operands = 0 : i64, tpu.core_type = #tpu.core_type<tc>, window_params = [{transform_indices = @transform_0, window_bounds = array<i64: 8, 32>}, {pipeline_mode = #tpu.pipeline_mode<synchronous>, transform_indices = @transform_1, window_bounds = array<i64: 8, 32>}, {pipeline_mode = #tpu.pipeline_mode<synchronous>, transform_indices = @transform_2, window_bounds = array<i64: 32, 32>}, {pipeline_mode = #tpu.pipeline_mode<synchronous>, transform_indices = @transform_3, window_bounds = array<i64: 1, 32>}, {pipeline_mode = #tpu.pipeline_mode<synchronous>, transform_indices = @transform_4, window_bounds = array<i64: 32, 64>}, {pipeline_mode = #tpu.pipeline_mode<synchronous>, transform_indices = @transform_5, window_bounds = array<i64: 1, 64>}, {transform_indices = @transform_6, window_bounds = array<i64: 8, 32>}]} {
    %c0 = arith.constant 0 : index
    %c0_0 = arith.constant 0 : index
    %0 = vector.load %arg1[%c0, %c0_0] : memref<8x32xf32, #tpu.memory_space<vmem>>, vector<8x32xf32>
    %1 = arith.truncf %0 : vector<8x32xf32> to vector<8x32xbf16>
    %c0_1 = arith.constant 0 : index
    %c0_2 = arith.constant 0 : index
    %2 = vector.load %arg3[%c0_1, %c0_2] : memref<32x32xbf16, #tpu.memory_space<vmem>>, vector<32x32xbf16>
    %cst = arith.constant dense<0.000000e+00> : vector<8x32xf32>
    %3 = tpu.matmul %1, %2, %cst {dimension_numbers = #tpu.dot_dimension_numbers<[1], [0], [0], [1], [0, 0, 1, 1], [], []>} : vector<8x32xbf16>, vector<32x32xbf16>, vector<8x32xf32> -> vector<8x32xf32>
    %c0_3 = arith.constant 0 : index
    %c0_4 = arith.constant 0 : index
    %4 = vector.load %arg4[%c0_3, %c0_4] : memref<1x32xf32, #tpu.memory_space<vmem>>, vector<1x32xf32>
    %5 = vector.broadcast %4 : vector<1x32xf32> to vector<8x32xf32>
    %6 = arith.addf %3, %5 : vector<8x32xf32>
    %c0_5 = arith.constant 0 : index
    %c0_6 = arith.constant 0 : index
    %7 = vector.load %arg2[%c0_5, %c0_6] : memref<8x32xf32, #tpu.memory_space<vmem>>, vector<8x32xf32>
    %8 = arith.truncf %7 : vector<8x32xf32> to vector<8x32xbf16>
    %c0_7 = arith.constant 0 : index
    %c0_8 = arith.constant 0 : index
    %9 = vector.load %arg5[%c0_7, %c0_8] : memref<32x64xbf16, #tpu.memory_space<vmem>>, vector<32x64xbf16>
    %cst_9 = arith.constant dense<0.000000e+00> : vector<8x64xf32>
    %10 = tpu.matmul %8, %9, %cst_9 {dimension_numbers = #tpu.dot_dimension_numbers<[1], [0], [0], [1], [0, 0, 1, 1], [], []>} : vector<8x32xbf16>, vector<32x64xbf16>, vector<8x64xf32> -> vector<8x64xf32>
    %c0_10 = arith.constant 0 : index
    %c0_11 = arith.constant 0 : index
    %11 = vector.load %arg6[%c0_10, %c0_11] : memref<1x64xf32, #tpu.memory_space<vmem>>, vector<1x64xf32>
    %12 = vector.broadcast %11 : vector<1x64xf32> to vector<8x64xf32>
    %13 = arith.addf %10, %12 : vector<8x64xf32>
    %14 = vector.shape_cast %6 : vector<8x32xf32> to vector<8x8x4xf32>
    %15 = arith.truncf %14 : vector<8x8x4xf32> to vector<8x8x4xbf16>
    %16 = tpu.transpose %15, [1, 0, 2] : vector<8x8x4xbf16> -> vector<8x8x4xbf16>
    %17 = vector.extract_strided_slice %13 {offsets = [0, 0], sizes = [8, 32], strides = [1, 1]} : vector<8x64xf32> to vector<8x32xf32>
    %18 = vector.shape_cast %17 : vector<8x32xf32> to vector<8x8x4xf32>
    %19 = arith.truncf %18 : vector<8x8x4xf32> to vector<8x8x4xbf16>
    %20 = tpu.transpose %19, [1, 0, 2] : vector<8x8x4xbf16> -> vector<8x8x4xbf16>
    %21 = vector.extract_strided_slice %13 {offsets = [0, 32], sizes = [8, 32], strides = [1, 1]} : vector<8x64xf32> to vector<8x32xf32>
    %22 = vector.shape_cast %21 : vector<8x32xf32> to vector<8x8x4xf32>
    %23 = arith.truncf %22 : vector<8x8x4xf32> to vector<8x8x4xbf16>
    %24 = tpu.transpose %23, [1, 0, 2] : vector<8x8x4xbf16> -> vector<8x8x4xbf16>
    "tpu.trace_start"() <{level = 10 : i32, message = "hqd,hkd->hqk"}> : () -> ()
    %cst_12 = arith.constant dense<0.000000e+00> : vector<8x8x8xf32>
    %25 = tpu.matmul %16, %20, %cst_12 {dimension_numbers = #tpu.dot_dimension_numbers<[2], [2], [1], [1], [0, 0, 0, 1, 1, 1], [0], [0]>} : vector<8x8x4xbf16>, vector<8x8x4xbf16>, vector<8x8x8xf32> -> vector<8x8x8xf32>
    "tpu.trace_stop"() : () -> ()
    %cst_13 = arith.constant 5.000000e-01 : f32
    %26 = vector.broadcast %cst_13 : f32 to vector<8x8x8xf32>
    %27 = arith.mulf %25, %26 : vector<8x8x8xf32>
    %cst_14 = arith.constant dense<0xFF800000> : vector<8x8xf32>
    %28 = vector.multi_reduction <maximumf>, %27, %cst_14 [2] : vector<8x8x8xf32> to vector<8x8xf32>
    %29 = vector.shape_cast %28 : vector<8x8xf32> to vector<8x8x1xf32>
    %30 = vector.broadcast %29 : vector<8x8x1xf32> to vector<8x8x8xf32>
    %31 = arith.subf %27, %30 : vector<8x8x8xf32>
    %32 = math.exp %31 : vector<8x8x8xf32>
    %cst_15 = arith.constant dense<0.000000e+00> : vector<8x8xf32>
    %33 = vector.multi_reduction <add>, %32, %cst_15 [2] : vector<8x8x8xf32> to vector<8x8xf32>
    %34 = vector.shape_cast %33 : vector<8x8xf32> to vector<8x8x1xf32>
    %35 = tpu.reciprocal %34 {approx = true} : vector<8x8x1xf32> -> vector<8x8x1xf32>
    %36 = vector.broadcast %35 : vector<8x8x1xf32> to vector<8x8x8xf32>
    %37 = arith.mulf %32, %36 : vector<8x8x8xf32>
    %38 = arith.truncf %37 : vector<8x8x8xf32> to vector<8x8x8xbf16>
    "tpu.trace_start"() <{level = 10 : i32, message = "hqk,hkd->hqd"}> : () -> ()
    %cst_16 = arith.constant dense<0.000000e+00> : vector<8x8x4xf32>
    %39 = tpu.matmul %38, %24, %cst_16 {dimension_numbers = #tpu.dot_dimension_numbers<[2], [1], [1], [2], [0, 0, 0, 1, 1, 2], [0], [0]>} : vector<8x8x8xbf16>, vector<8x8x4xbf16>, vector<8x8x4xf32> -> vector<8x8x4xf32>
    "tpu.trace_stop"() : () -> ()
    %40 = tpu.transpose %39, [1, 0, 2] : vector<8x8x4xf32> -> vector<8x8x4xf32>
    %41 = vector.shape_cast %40 : vector<8x8x4xf32> to vector<8x32xf32>
    %c0_17 = arith.constant 0 : index
    %c0_18 = arith.constant 0 : index
    %42 = vector.load %arg7[%c0_17, %c0_18] : memref<8x32xf32, #tpu.memory_space<vmem>>, vector<8x32xf32>
    tpu.vector_store %arg7[%c0_17, %c0_18], %41 {strides = array<i32>} : memref<8x32xf32, #tpu.memory_space<vmem>>, vector<8x32xf32>,
    return
  }
  func.func @transform_0(%arg0: i32) -> (i32, i32) {
    %c0_i32 = arith.constant 0 : i32
    %c0_i32_0 = arith.constant 0 : i32
    return %arg0, %c0_i32 : i32, i32
  }
  func.func @transform_1(%arg0: i32) -> (i32, i32) {
    %c0_i32 = arith.constant 0 : i32
    %c0_i32_0 = arith.constant 0 : i32
    %c0_i32_1 = arith.constant 0 : i32
    return %c0_i32, %c0_i32_0 : i32, i32
  }
  func.func @transform_2(%arg0: i32) -> (i32, i32) {
    %c0_i32 = arith.constant 0 : i32
    %c0_i32_0 = arith.constant 0 : i32
    %c0_i32_1 = arith.constant 0 : i32
    return %c0_i32, %c0_i32_0 : i32, i32
  }
  func.func @transform_3(%arg0: i32) -> (i32, i32) {
    %c0_i32 = arith.constant 0 : i32
    %c0_i32_0 = arith.constant 0 : i32
    %c0_i32_1 = arith.constant 0 : i32
    return %c0_i32, %c0_i32_0 : i32, i32
  }
  func.func @transform_4(%arg0: i32) -> (i32, i32) {
    %c0_i32 = arith.constant 0 : i32
    %c0_i32_0 = arith.constant 0 : i32
    %c0_i32_1 = arith.constant 0 : i32
    return %c0_i32, %c0_i32_0 : i32, i32
  }
  func.func @transform_5(%arg0: i32) -> (i32, i32) {
    %c0_i32 = arith.constant 0 : i32
    %c0_i32_0 = arith.constant 0 : i32
    %c0_i32_1 = arith.constant 0 : i32
    return %c0_i32, %c0_i32_0 : i32, i32
  }
  func.func @transform_6(%arg0: i32) -> (i32, i32) {
    %c0_i32 = arith.constant 0 : i32
    %c0_i32_0 = arith.constant 0 : i32
    return %arg0, %c0_i32 : i32, i32
  }
}

</mosaic_0001>

<bundles_post_ra>
// kernel: tpu_custom_call.1
= control target key start
LH: loop header
LB: loop body
LE: loop exit
PB: predicated region body
PF: predicated region fallthrough
CT: control target
= control target key end

     0   :  { %11 = vsyncpa [#allocation3], 0  ;;  %s2979_s0 = inlined_call_operand.hbm [shape: f32[8,32], index: 0, kind: input, shape index: {}]   ;;  %s2980_s1 = inlined_call_operand.hbm [shape: f32[8,32], index: 1, kind: input, shape index: {}]   ;;  %s2981_s2 = inlined_call_operand.hbm [shape: bf16[32,32], index: 2, kind: input, shape index: {}]   ;;  %s2982_s3 = inlined_call_operand.vmem [shape: f32[1,32], index: 3, kind: input, shape index: {}]   ;;  %s2983_s4 = inlined_call_operand.hbm [shape: bf16[32,64], index: 4, kind: input, shape index: {}]   ;;  %s2984_s5 = inlined_call_operand.vmem [shape: f32[1,64], index: 5, kind: input, shape index: {}]   ;;  %s2985_s6 = inlined_call_operand.hbm [shape: f32[8,32], index: 6, kind: output, shape index: {}]  }
   0x1   :  { %12 = vsyncpa [#allocation6], 0 }
   0x2   :  { %13 = vsyncpa [#allocation9], 0 }
   0x3   :  { %14 = vsyncpa [#allocation4], 0  ;;  %s2526_s21 = smov [#allocation5]   ;;  %s2527_s23 = smov [#allocation2]  }
   0x4   :  { %s31_s22 = sshll.u32 %s2526_s21, 4  ;;  %s21_s24 = sshll.u32 %s2527_s23, 4  ;;  %s32_s22 = int_to_ptr.vmem [resolvable:$true] %s31_s22  ;;  %s22_s24 = int_to_ptr.vmem [resolvable:$true] %s21_s24 }
   0x5   :  { %s2426_s25 = scalar_lea.vmem %s32_s22, 128  ;;  %p2431_p1 = scmp.lt.s32.totalorder %s32_s22, %s32_s22 }
   0x6   :  { %p2427_p0 = scmp.ne.s32.totalorder %s32_s22, %s2426_s25  ;;  %p2432_p2 = scmp.lt.s32.totalorder %s2426_s25, %s2426_s25 }
   0x8   :  { %p2433_p3 = por %p2432_p2, %p2431_p1 }
   0xa   :  { %p2434_p4 = pnand %p2433_p3, %p2427_p0 }
   0xc   :  { %2437 = shalt.err (!%p2434_p4)
}
   0xd   :  { %34 = dma.hbm_to_vmem [thread:$0]  %s2980_s1, 128, %s32_s22, [#allocation6]  }
   0xe   :  { %s2446_s28 = scalar_lea.vmem %s22_s24, 128  ;;  %p2451_p6 = scmp.lt.s32.totalorder %s22_s24, %s22_s24 }
   0xf   :  { %p2447_p5 = scmp.ne.s32.totalorder %s22_s24, %s2446_s28  ;;  %p2452_p7 = scmp.lt.s32.totalorder %s2446_s28, %s2446_s28 }
  0x11   :  { %p2453_p8 = por %p2452_p7, %p2451_p6 }
  0x13   :  { %p2454_p9 = pnand %p2453_p8, %p2447_p5 }
  0x15   :  { %2457 = shalt.err (!%p2454_p9)
}
  0x16   :  { %24 = dma.hbm_to_vmem [thread:$0]  %s2979_s0, 128, %s22_s24, [#allocation3]  }
  0x17   :  { %s2528_s7 = smov [#allocation7]  }
  0x18   :  { %s40_s8 = sshll.u32 %s2528_s7, 4  ;;  %s41_s8 = int_to_ptr.vmem [resolvable:$true] %s40_s8 }
  0x19   :  { %s2466_s9 = scalar_lea.vmem %s41_s8, 256  ;;  %p2471_p11 = scmp.lt.s32.totalorder %s41_s8, %s41_s8 }
  0x1a   :  { %p2467_p10 = scmp.ne.s32.totalorder %s41_s8, %s2466_s9  ;;  %p2472_p12 = scmp.lt.s32.totalorder %s2466_s9, %s2466_s9 }
  0x1c   :  { %p2473_p13 = por %p2472_p12, %p2471_p11 }
  0x1e   :  { %p2474_p0 = pnand %p2473_p13, %p2467_p10 }
  0x20   :  { %2477 = shalt.err (!%p2474_p0)
}
  0x21   :  { %s2529_s1 = smov 64   ;;  %s2530_s10 = smov 4  }
  0x22   :  { %46 = dma.hbm_to_vmem [thread:$0]  %s2981_s2, 256, %s41_s8, [#allocation6], %s2529_s1, %s2529_s1, %s2530_s10  }
  0x23   :  { %s2531_s13 = smov [#allocation8]  }
  0x24   :  { %s54_s14 = sshll.u32 %s2531_s13, 4  ;;  %s55_s14 = int_to_ptr.vmem [resolvable:$true] %s54_s14 }
  0x25   :  { %s2486_s0 = scalar_lea.vmem %s55_s14, 256  ;;  %p2491_p2 = scmp.lt.s32.totalorder %s55_s14, %s55_s14 }
  0x26   :  { %p2487_p1 = scmp.ne.s32.totalorder %s55_s14, %s2486_s0  ;;  %p2492_p3 = scmp.lt.s32.totalorder %s2486_s0, %s2486_s0 }
  0x28   :  { %p2493_p4 = por %p2492_p3, %p2491_p2 }
  0x2a   :  { %p2494_p5 = pnand %p2493_p4, %p2487_p1 }
  0x2c   :  { %2497 = shalt.err (!%p2494_p5)
}
  0x2d   :  { %60 = dma.hbm_to_vmem [thread:$0]  %s2983_s4, 256, %s55_s14, [#allocation9], %s2529_s1, %s2529_s1, %s2530_s10  }
  0x2e   :  { %2518 = dma.done.wait [#allocation3], 128  }
  0x2f   :  { %2519 = vsyncadd [#allocation3], 4294967168 }
  0x30   :  { %2520 = dma.done.wait [#allocation6], 384  }
  0x31   :  { %2521 = vsyncadd [#allocation6], 4294966912 }
  0x32   :  { %2522 = dma.done.wait [#allocation9], 256  }
  0x33   :  { %2523 = vsyncadd [#allocation9], 4294967040  ;;  %v2532_v0 = vmov 0.0   ;;  %vm2533_vm0 = vmmov 0   ;;  %v2382_v1 = vld [vmem:[#allocation8 + $0x8] sm:$0xff]   ;;  %v2383_v2 = vld [vmem:[#allocation8] sm:$0xff]   ;;  %v240_v23 = vlaneseq }
  0x34   :  { %2252 = vmatprep.subr.bf16.mxu1 %v2532_v0  ;;  %2244 = vmatprep.subr.bf16.mxu0 %v2532_v0  ;;  %v2384_v3 = vld [vmem:[#allocation7 + $0x8] sm:$0xff]   ;;  %v145_v4 = vld [vmem:[#allocation5] sm:$0xff]  ;;  %v2385_v5 = vld [vmem:[#allocation7] sm:$0xff]   ;;  %vm101_vm1 = vcmask 261120   ;;  %s2534_s17 = smov 116   ;;  %s2535_s18 = smov 124  }
  0x35   :  { %2256 = vmatprep.mubr.msk.bf16.mxu1 %vm2533_vm0, %v2532_v0  ;;  %2248 = vmatprep.mubr.msk.bf16.mxu0 %vm2533_vm0, %v2532_v0  ;;  %v76_v6 = vld [vmem:[#allocation2] sm:$0xff]  ;;  %v146_v7 = vpack.c.bf16 %v145_v4, %v145_v4  ;;  %s2536_s19 = smov 112   ;;  %s2537_s20 = smov 120   ;;  %v2542_v21 = vmov 1983009808   ;;  %v241_v27 = vshrl.u32 %v240_v23, 7 }
  0x36   :  { %2253 = vmatpush3.bf16.msra.mxu1 %v2382_v1  ;;  %2245 = vmatpush3.bf16.msra.mxu0 %v2384_v3  ;;  %v77_v8 = vpack.c.bf16 %v76_v6, %v76_v6  ;;  %v2166_v9 = vld [vmem:[%s2984_s5] ss:$0 sm:$0xff]  ;;  %s2538_s5 = smov 104   ;;  %s2539_s23 = smov 108   ;;  %v238_v22 = vunpack.c.l.s4 %v2542_v21  ;;  %v2543_v28 = vmov 1934713408  }
  0x37   :  { %2254 = vmatprep.subr.bf16.mxu1 %v2532_v0  ;;  %2246 = vmatprep.subr.bf16.mxu0 %v2532_v0  ;;  %v2162_v18 = vld [vmem:[%s2982_s3] ss:$0 sm:$0xff]  ;;  %s2540_s24 = smov 100   ;;  %s2541_s3 = smov 96   ;;  %v302_v29 = vunpack.c.l.s4 %v2543_v28  ;;  %vm989_vm2 = vcmask 31744   ;;  %vm1366_vm3 = vcmask 64512  }
  0x38   :  { %v239_v26 = vunpack.c.0.s8 %v238_v22  ;;  %vm1466_vm4 = vcmask 1043456   ;;  %s2545_s25 = smov 8   ;;  %s2546_s26 = smov 12   ;;  %vm2134_vm5 = vcmask 97280   ;;  %vm2136_vm6 = vcmask 130048  }
  0x39   :  { %v303_v37 = vunpack.c.0.s8 %v302_v29  ;;  %s2547_s27 = smov 20   ;;  %s2548_s28 = smov 16   ;;  %vm2138_vm7 = vcmask 162816   ;;  %vm2140_vm8 = vcmask 195584   ;;  %vm2142_vm9 = vcmask 228352  }
  0x3a   :  { %2255 = vmatpush3.bf16.msra.mxu1 %v2383_v2  ;;  %2247 = vmatpush3.bf16.msra.mxu0 %v2385_v5  ;;  %v2637_v34 = vsub.s32 %v239_v26, %v241_v27  ;;  %s2549_s29 = smov 28   ;;  %s2550_s30 = smov 24  }
  0x3b   :  { %2266 = vmatprep.subr.bf16.mxu1 %v2532_v0  ;;  %2260 = vmatprep.subr.bf16.mxu0 %v2532_v0  ;;  %v2648_v44 = vsub.s32 %v303_v37, %v241_v27  ;;  %s2551_s7 = smov [#allocation10]  }
  0x3c   :  { %s2151_s8 = sshll.u32 %s2551_s7, 4  ;;  %s2152_s8 = int_to_ptr.vmem [resolvable:$true] %s2151_s8 }
  0x3d   :  { %2257 = vmatmul.mubr.msk.bf16.vlgmr.msra.gmra.mxu1 %vm101_vm1, %v146_v7  ;;  %2249 = vmatmul.mubr.msk.bf16.vlgmr.msra.gmra.mxu0 %vm101_vm1, %v77_v8  ;;  %s2498_s9 = scalar_lea.vmem %s2152_s8, 128  ;;  %p2503_p7 = scmp.lt.s32.totalorder %s2152_s8, %s2152_s8 }
  0x3e   :  { %2268 = vmatprep.mubr.msk.bf16.mxu1 %vm2533_vm0, %v2532_v0  ;;  %2262 = vmatprep.mubr.msk.bf16.mxu0 %vm2533_vm0, %v2532_v0  ;;  %p2499_p6 = scmp.ne.s32.totalorder %s2152_s8, %s2498_s9  ;;  %p2504_p8 = scmp.lt.s32.totalorder %s2498_s9, %s2498_s9 }
  0x40   :  { %p2505_p9 = por %p2504_p8, %p2503_p7 }
  0x42   :  { %p2506_p10 = pnand %p2505_p9, %p2499_p6 }
  0xfd   :  { %v207_v10 = vpop.f32.mrf.mxu1  ;;  %v139_v13 = vpop.f32.mrf.mxu0 }
  0xfe   :  { %v208_v11 = vadd.f32 %v2166_v9, %v207_v10  ;;  %v2623_v20 = vadd.f32 %v2162_v18, %v139_v13 }
  0xff   :  { %v2258_v12 = vpop.f32.mrf.mxu1  ;;  %v2250_v15 = vpop.f32.mrf.mxu0 }
 0x100   :  { %478 = vrot.lane.b32.xlu1 %v208_v11, %s2534_s17  ;;  %472 = vrot.lane.b32.xlu0 %v208_v11, %s2535_s18 }
 0x101   :  { %v210_v14 = vpop.f32.mrf.mxu1  ;;  %v142_v17 = vpop.f32.mrf.mxu0 }
 0x103   :  { %v2259_v16 = vpop.f32.mrf.mxu1  ;;  %v2251_v19 = vpop.f32.mrf.mxu0 }
 0x104   :  { %481 = vrot.lane.b32.xlu1 %v208_v11, %s2536_s19  ;;  %475 = vrot.lane.b32.xlu0 %v208_v11, %s2537_s20 }
 0x108   :  { %487 = vrot.lane.b32.xlu1 %v208_v11, %s2538_s5  ;;  %484 = vrot.lane.b32.xlu0 %v208_v11, %s2539_s23 }
 0x10c   :  { %490 = vrot.lane.b32.xlu0 %v208_v11, %s2540_s24  ;;  %214 = vrot.lane.b32.xlu1 %v2623_v20, %s2535_s18 }
 0x110   :  { %217 = vrot.lane.b32.xlu0 %v2623_v20, %s2537_s20  ;;  %220 = vrot.lane.b32.xlu1 %v2623_v20, %s2534_s17 }
 0x114   :  { %223 = vrot.lane.b32.xlu0 %v2623_v20, %s2536_s19  ;;  %226 = vrot.lane.b32.xlu1 %v2623_v20, %s2539_s23 }
 0x118   :  { %229 = vrot.lane.b32.xlu0 %v2623_v20, %s2538_s5  ;;  %232 = vrot.lane.b32.xlu1 %v2623_v20, %s2540_s24 }
 0x11c   :  { %729 = vrot.lane.b32.xlu1 %v208_v11, %s2541_s3 }
 0x172   :  { %v479_v24 = vpop.permute.xlu1 %478  ;;  %v473_v25 = vpop.permute.xlu0 %472 }
 0x173   :  { %731 = vrot.lane.b32.xlu0 %v473_v25, %s2541_s3  ;;  %v509_v35 = vcombine.low %v473_v25, %v479_v24  ;;  %v510_v36 = vcombine.high %v473_v25, %v479_v24 }
 0x175   :  { %v517_v42 = vrot.slane %v509_v35, %v2637_v34  ;;  %v524_v43 = vrot.slane %v510_v36, %v2637_v34 }
 0x176   :  { %v2634_v30 = vpop.permute.xlu1 %481  ;;  %v476_v31 = vpop.permute.xlu0 %475 }
 0x177   :  { %v493_v32 = vcombine.low %v208_v11, %v476_v31  ;;  %v494_v33 = vcombine.high %v208_v11, %v476_v31  ;;  %733 = vrot.lane.b32.xlu1 %v476_v31, %s2541_s3 }
 0x179   :  { %v501_v38 = vrot.slane %v493_v32, %v2637_v34  ;;  %v508_v39 = vrot.slane %v494_v33, %v2637_v34 }
 0x17a   :  { %v2641_v40 = vpop.permute.xlu1 %487  ;;  %v2643_v41 = vpop.permute.xlu0 %484 }
 0x17b   :  { %735 = vrot.lane.b32.xlu1 %v479_v24, %s2541_s3  ;;  %v525_v45 = vcombine.low %v2634_v30, %v2641_v40  ;;  %v526_v46 = vcombine.high %v2634_v30, %v2641_v40  ;;  %v557_v47 = vcombine.low %v501_v38, %v517_v42  ;;  %v558_v48 = vcombine.high %v501_v38, %v517_v42 }
 0x17c   :  { %v573_v49 = vcombine.low %v508_v39, %v524_v43  ;;  %v574_v50 = vcombine.high %v508_v39, %v524_v43 }
 0x17d   :  { %v533_v55 = vrot.slane %v525_v45, %v2637_v34  ;;  %v540_v56 = vrot.slane %v526_v46, %v2637_v34  ;;  %v565_v59 = vrot.slane %v557_v47, %v2648_v44  ;;  %v572_v60 = vrot.slane %v558_v48, %v2648_v44 }
 0x17e   :  { %v2654_v51 = vpop.permute.xlu0 %490  ;;  %v215_v52 = vpop.permute.xlu1 %214  ;;  %v581_v61 = vrot.slane %v573_v49, %v2648_v44  ;;  %v588_v62 = vrot.slane %v574_v50, %v2648_v44 }
 0x17f   :  { %v541_v53 = vcombine.low %v2643_v41, %v2654_v51  ;;  %v542_v54 = vcombine.high %v2643_v41, %v2654_v51 }
 0x181   :  { %v549_v57 = vrot.slane %v541_v53, %v2637_v34  ;;  %v556_v58 = vrot.slane %v542_v54, %v2637_v34 }
 0x182   :  { %v218_v63 = vpop.permute.xlu0 %217  ;;  %v221_v1 = vpop.permute.xlu1 %220 }
 0x183   :  { %v589_v2 = vcombine.low %v533_v55, %v549_v57  ;;  %v590_v3 = vcombine.high %v533_v55, %v549_v57  ;;  %v605_v4 = vcombine.low %v540_v56, %v556_v58  ;;  %v606_v5 = vcombine.high %v540_v56, %v556_v58 }
 0x184   :  { %v235_v6 = vcombine.low %v2623_v20, %v218_v63  ;;  %v236_v7 = vcombine.high %v2623_v20, %v218_v63  ;;  %v251_v8 = vcombine.low %v215_v52, %v221_v1  ;;  %v252_v9 = vcombine.high %v215_v52, %v221_v1 }
 0x185   :  { %v597_v10 = vrot.slane %v589_v2, %v2648_v44  ;;  %v604_v11 = vrot.slane %v590_v3, %v2648_v44  ;;  %v613_v12 = vrot.slane %v605_v4, %v2648_v44  ;;  %v620_v13 = vrot.slane %v606_v5, %v2648_v44 }
 0x186   :  { %v243_v14 = vrot.slane %v235_v6, %v2637_v34  ;;  %v250_v15 = vrot.slane %v236_v7, %v2637_v34  ;;  %v259_v16 = vrot.slane %v251_v8, %v2637_v34  ;;  %v266_v17 = vrot.slane %v252_v9, %v2637_v34  ;;  %v224_v18 = vpop.permute.xlu0 %223  ;;  %v227_v19 = vpop.permute.xlu1 %226 }
 0x187   :  { %v621_v20 = vcombine.low %v565_v59, %v597_v10  ;;  %v622_v21 = vcombine.high %v565_v59, %v597_v10  ;;  %v623_v22 = vcombine.low %v572_v60, %v604_v11  ;;  %v624_v23 = vcombine.high %v572_v60, %v604_v11 }
 0x188   :  { %v625_v24 = vcombine.low %v581_v61, %v613_v12  ;;  %v626_v25 = vcombine.high %v581_v61, %v613_v12  ;;  %v627_v26 = vcombine.low %v588_v62, %v620_v13  ;;  %v628_v27 = vcombine.high %v588_v62, %v620_v13 }
 0x189   :  { %v299_v36 = vcombine.low %v243_v14, %v259_v16  ;;  %v300_v37 = vcombine.high %v243_v14, %v259_v16  ;;  %v315_v38 = vcombine.low %v250_v15, %v266_v17  ;;  %v316_v56 = vcombine.high %v250_v15, %v266_v17 }
 0x18a   :  { %v2174_v28 = vpack.c.bf16 %v625_v24, %v621_v20  ;;  %v2175_v29 = vpack.c.bf16 %v627_v26, %v623_v22  ;;  %v2176_v31 = vpack.c.bf16 %v626_v25, %v622_v21  ;;  %v2177_v32 = vpack.c.bf16 %v628_v27, %v624_v23  ;;  %v230_v33 = vpop.permute.xlu0 %229  ;;  %v233_v35 = vpop.permute.xlu1 %232 }
 0x18b   :  { %v267_v39 = vcombine.low %v224_v18, %v230_v33  ;;  %v268_v42 = vcombine.high %v224_v18, %v230_v33  ;;  %v283_v43 = vcombine.low %v227_v19, %v233_v35  ;;  %v284_v45 = vcombine.high %v227_v19, %v233_v35 }
 0x18c   :  { %v2679_v46 = vrot.slane %v2174_v28, %v2637_v34  ;;  %v2682_v47 = vrot.slane %v2175_v29, %v2637_v34  ;;  %v2685_v48 = vrot.slane %v2176_v31, %v2637_v34  ;;  %v686_v49 = vrot.slane %v2177_v32, %v2637_v34 }
 0x18d   :  { %v275_v50 = vrot.slane %v267_v39, %v2637_v34  ;;  %v282_v52 = vrot.slane %v268_v42, %v2637_v34  ;;  %v291_v53 = vrot.slane %v283_v43, %v2637_v34  ;;  %v298_v54 = vrot.slane %v284_v45, %v2637_v34 }
 0x18e   :  { %v307_v55 = vrot.slane %v299_v36, %v2648_v44  ;;  %v653_v57 = vcombine.low %v2679_v46, %v2682_v47  ;;  %v687_v58 = vcombine.low %v2685_v48, %v686_v49  ;;  %v314_v63 = vrot.slane %v300_v37, %v2648_v44 }
 0x18f   :  { %v331_v59 = vcombine.low %v275_v50, %v291_v53  ;;  %v332_v60 = vcombine.high %v275_v50, %v291_v53  ;;  %v347_v61 = vcombine.low %v282_v52, %v298_v54  ;;  %v348_v62 = vcombine.high %v282_v52, %v298_v54 }
 0x190   :  { %v323_v1 = vrot.slane %v315_v38, %v2648_v44  ;;  %v661_v2 = vrot.slane %v653_v57, %v2648_v44  ;;  %v695_v3 = vrot.slane %v687_v58, %v2648_v44  ;;  %v330_v8 = vrot.slane %v316_v56, %v2648_v44 }
 0x191   :  { %v339_v4 = vrot.slane %v331_v59, %v2648_v44  ;;  %v346_v5 = vrot.slane %v332_v60, %v2648_v44  ;;  %v355_v6 = vrot.slane %v347_v61, %v2648_v44  ;;  %v362_v7 = vrot.slane %v348_v62, %v2648_v44 }
 0x192   :  { %v707_v9 = vpack.i.b16 %v695_v3, %v661_v2  ;;  %v708_v10 = vshrl.u32 %v661_v2, 16  ;;  %v709_v11 = vshrl.u32 %v695_v3, 16  ;;  %v2544_v22 = vmov 0  }
 0x193   :  { %v363_v12 = vcombine.low %v307_v55, %v339_v4  ;;  %v364_v13 = vcombine.high %v307_v55, %v339_v4  ;;  %v365_v14 = vcombine.low %v314_v63, %v346_v5  ;;  %v366_v15 = vcombine.high %v314_v63, %v346_v5 }
 0x194   :  { %v367_v16 = vcombine.low %v323_v1, %v355_v6  ;;  %v368_v17 = vcombine.high %v323_v1, %v355_v6  ;;  %v369_v18 = vcombine.low %v330_v8, %v362_v7  ;;  %v370_v19 = vcombine.high %v330_v8, %v362_v7 }
 0x195   :  { %v994_v20 = vsel %vm989_vm2, %v707_v9, 0  ;;  %v710_v21 = vpack.i.b16 %v709_v11, %v708_v10  ;;  %v669_v23 = vcombine.high %v661_v2, %v2544_v22  ;;  %v703_v24 = vcombine.high %v695_v3, %v2544_v22 }
 0x196   :  { %v2170_v25 = vpack.c.bf16 %v367_v16, %v363_v12  ;;  %v2171_v26 = vpack.c.bf16 %v369_v18, %v365_v14  ;;  %v2172_v27 = vpack.c.bf16 %v368_v17, %v364_v13  ;;  %v2173_v28 = vpack.c.bf16 %v370_v19, %v366_v15  ;;  %2261 = vmatpush3.bf16.xpose.msra.mxu0 %v994_v20 }
 0x197   :  { %v1040_v29 = vsel %vm989_vm2, %v710_v21, 0  ;;  %2272 = vmatprep.subr.bf16.mxu0 %v2532_v0  ;;  %v654_v36 = vcombine.high %v2679_v46, %v2682_v47  ;;  %v688_v37 = vcombine.high %v2685_v48, %v686_v49  ;;  %v714_v42 = vshrl.u32 %v669_v23, 16 }
 0x198   :  { %v386_v31 = vrot.slane %v2170_v25, %v2637_v34  ;;  %v394_v32 = vrot.slane %v2171_v26, %v2637_v34  ;;  %v420_v33 = vrot.slane %v2172_v27, %v2637_v34  ;;  %v428_v35 = vrot.slane %v2173_v28, %v2637_v34  ;;  %2267 = vmatpush3.bf16.xpose.msra.mxu1 %v1040_v29 }
 0x199   :  { %2278 = vmatprep.subr.bf16.mxu1 %v2532_v0  ;;  %v715_v43 = vshrl.u32 %v703_v24, 16  ;;  %v713_v52 = vpack.i.b16 %v703_v24, %v669_v23  ;;  %v668_v53 = vrot.slane %v654_v36, %v2648_v44  ;;  %v702_v54 = vrot.slane %v688_v37, %v2648_v44 }
 0x19a   :  { %v395_v38 = vcombine.low %v386_v31, %v394_v32  ;;  %v429_v39 = vcombine.low %v420_v33, %v428_v35  ;;  %v396_v63 = vcombine.high %v386_v31, %v394_v32  ;;  %v430_v1 = vcombine.high %v420_v33, %v428_v35  ;;  %v2766_v31 = vpop.permute.xlu1 %729 }
 0x19b   :  { %v716_v58 = vpack.i.b16 %v715_v43, %v714_v42  ;;  %v1086_v46 = vsel %vm989_vm2, %v713_v52, 0  ;;  %v720_v60 = vshrl.u32 %v668_v53, 16  ;;  %v721_v61 = vshrl.u32 %v702_v54, 16 }
 0x19c   :  { %v403_v45 = vrot.slane %v395_v38, %v2648_v44  ;;  %v437_v50 = vrot.slane %v429_v39, %v2648_v44  ;;  %v719_v62 = vpack.i.b16 %v702_v54, %v668_v53  ;;  %v670_v6 = vcombine.high %v668_v53, %v2544_v22 }
 0x19d   :  { %v1132_v59 = vsel %vm989_vm2, %v716_v58, 0  ;;  %v722_v5 = vpack.i.b16 %v721_v61, %v720_v60  ;;  %v704_v7 = vcombine.high %v702_v54, %v2544_v22  ;;  %v410_v10 = vrot.slane %v396_v63, %v2648_v44 }
 0x19e   :  { %v449_v55 = vpack.i.b16 %v437_v50, %v403_v45  ;;  %v450_v56 = vshrl.u32 %v403_v45, 16  ;;  %v451_v57 = vshrl.u32 %v437_v50, 16  ;;  %v411_v48 = vcombine.high %v403_v45, %v2544_v22 }
 0x19f   :  { %v445_v49 = vcombine.high %v437_v50, %v2544_v22  ;;  %v1178_v8 = vsel %vm989_vm2, %v719_v62, 0  ;;  %v444_v11 = vrot.slane %v430_v1, %v2648_v44  ;;  %v1224_v12 = vsel %vm989_vm2, %v722_v5, 0 }
 0x1a0   :  { %2263 = vmatmul.mubr.msk.bf16.vlgmr.msra.gmra.mxu0 %vm989_vm2, %v449_v55  ;;  %v452_v47 = vpack.i.b16 %v451_v57, %v450_v56  ;;  %v456_v2 = vshrl.u32 %v411_v48, 16  ;;  %v726_v13 = vshrl.u32 %v670_v6, 16  ;;  %v727_v14 = vshrl.u32 %v704_v7, 16 }
 0x1a1   :  { %2273 = vmatpush3.bf16.xpose.msra.mxu0 %v1086_v46  ;;  %2274 = vmatprep.mubr.msk.bf16.mxu0 %vm2533_vm0, %v2532_v0  ;;  %v457_v3 = vshrl.u32 %v445_v49, 16  ;;  %v455_v4 = vpack.i.b16 %v445_v49, %v411_v48  ;;  %v725_v15 = vpack.i.b16 %v704_v7, %v670_v6  ;;  %v462_v16 = vshrl.u32 %v410_v10, 16 }
 0x1a2   :  { %2269 = vmatmul.mubr.msk.bf16.vlgmr.msra.gmra.mxu1 %vm989_vm2, %v452_v47  ;;  %2284 = vmatprep.subr.bf16.mxu0 %v2532_v0  ;;  %v463_v17 = vshrl.u32 %v444_v11, 16  ;;  %v461_v18 = vpack.i.b16 %v444_v11, %v410_v10  ;;  %v728_v19 = vpack.i.b16 %v727_v14, %v726_v13  ;;  %v412_v23 = vcombine.high %v410_v10, %v2544_v22 }
 0x1a3   :  { %2279 = vmatpush3.bf16.xpose.msra.mxu1 %v1132_v59  ;;  %2280 = vmatprep.mubr.msk.bf16.mxu1 %vm2533_vm0, %v2532_v0  ;;  %v458_v9 = vpack.i.b16 %v457_v3, %v456_v2  ;;  %v1270_v20 = vsel %vm989_vm2, %v725_v15, 0  ;;  %v446_v24 = vcombine.high %v444_v11, %v2544_v22 }
 0x1a4   :  { %2290 = vmatprep.subr.bf16.mxu1 %v2532_v0  ;;  %v464_v21 = vpack.i.b16 %v463_v17, %v462_v16  ;;  %v1316_v25 = vsel %vm989_vm2, %v728_v19, 0  ;;  %v468_v26 = vshrl.u32 %v412_v23, 16 }
 0x1a5   :  { %v469_v27 = vshrl.u32 %v446_v24, 16  ;;  %v467_v28 = vpack.i.b16 %v446_v24, %v412_v23 }
 0x1a7   :  { %v470_v29 = vpack.i.b16 %v469_v27, %v468_v26 }
 0x1a8   :  { %2275 = vmatmul.mubr.msk.bf16.vlgmr.msra.gmra.mxu0 %vm989_vm2, %v455_v4 }
 0x1a9   :  { %2285 = vmatpush3.bf16.xpose.msra.mxu0 %v1178_v8  ;;  %2286 = vmatprep.mubr.msk.bf16.mxu0 %vm2533_vm0, %v2532_v0 }
 0x1aa   :  { %2281 = vmatmul.mubr.msk.bf16.vlgmr.msra.gmra.mxu1 %vm989_vm2, %v458_v9  ;;  %2296 = vmatprep.subr.bf16.mxu0 %v2532_v0 }
 0x1ab   :  { %2291 = vmatpush3.bf16.xpose.msra.mxu1 %v1224_v12  ;;  %2292 = vmatprep.mubr.msk.bf16.mxu1 %vm2533_vm0, %v2532_v0 }
 0x1ac   :  { %2302 = vmatprep.subr.bf16.mxu1 %v2532_v0 }
 0x1b0   :  { %2287 = vmatmul.mubr.msk.bf16.vlgmr.msra.gmra.mxu0 %vm989_vm2, %v461_v18 }
 0x1b1   :  { %2297 = vmatpush3.bf16.xpose.msra.mxu0 %v1270_v20  ;;  %2298 = vmatprep.mubr.msk.bf16.mxu0 %vm2533_vm0, %v2532_v0 }
 0x1b2   :  { %2293 = vmatmul.mubr.msk.bf16.vlgmr.msra.gmra.mxu1 %vm989_vm2, %v464_v21  ;;  %2308 = vmatprep.subr.bf16.mxu0 %v2532_v0 }
 0x1b3   :  { %2303 = vmatpush3.bf16.xpose.msra.mxu1 %v1316_v25  ;;  %2304 = vmatprep.mubr.msk.bf16.mxu1 %vm2533_vm0, %v2532_v0 }
 0x1b4   :  { %2314 = vmatprep.subr.bf16.mxu1 %v2532_v0 }
 0x1b8   :  { %2299 = vmatmul.mubr.msk.bf16.vlgmr.msra.gmra.mxu0 %vm989_vm2, %v467_v28 }
 0x1b9   :  { %2310 = vmatprep.mubr.msk.bf16.mxu0 %vm2533_vm0, %v2532_v0 }
 0x1ba   :  { %2305 = vmatmul.mubr.msk.bf16.vlgmr.msra.gmra.mxu1 %vm989_vm2, %v470_v29 }
 0x1bb   :  { %2316 = vmatprep.mubr.msk.bf16.mxu1 %vm2533_vm0, %v2532_v0 }
 0x1e5   :  { %v2795_v26 = vpop.permute.xlu0 %731 }
 0x1e9   :  { %v2768_v32 = vpop.permute.xlu1 %733 }
 0x1ea   :  { %v753_v33 = vcombine.low %v2766_v31, %v2768_v32  ;;  %v754_v35 = vcombine.high %v2766_v31, %v2768_v32 }
 0x1ed   :  { %v2797_v27 = vpop.permute.xlu1 %735 }
 0x260   :  { %v1030_v36 = vpop.f32.mrf.mxu0 }
 0x261   :  { %v1358_v37 = vmul.f32 0.5, %v1030_v36 }
 0x262   :  { %v2264_v38 = vpop.f32.mrf.mxu0  ;;  %v1076_v39 = vpop.f32.mrf.mxu1 }
 0x263   :  { %v1359_v42 = vmul.f32 0.5, %v1076_v39  ;;  %v1367_v43 = vsel %vm1366_vm3, %v1358_v37, -inf }
 0x264   :  { %v2270_v45 = vpop.f32.mrf.mxu1  ;;  %1368 = vmax.xlane.f32.xlu0 %v1367_v43  ;;  %v1033_v50 = vpop.f32.mrf.mxu0 }
 0x265   :  { %v1370_v52 = vsel %vm1366_vm3, %v1359_v42, -inf }
 0x266   :  { %1371 = vmax.xlane.f32.xlu1 %v1370_v52  ;;  %v2265_v53 = vpop.f32.mrf.mxu0  ;;  %v1079_v54 = vpop.f32.mrf.mxu1 }
 0x268   :  { %v2271_v55 = vpop.f32.mrf.mxu1  ;;  %v1122_v56 = vpop.f32.mrf.mxu0 }
 0x269   :  { %v2776_v57 = vmul.f32 0.5, %v1122_v56 }
 0x26a   :  { %v2276_v58 = vpop.f32.mrf.mxu0  ;;  %v1168_v46 = vpop.f32.mrf.mxu1 }
 0x26b   :  { %v2778_v47 = vmul.f32 0.5, %v1168_v46  ;;  %v1373_v48 = vsel %vm1366_vm3, %v2776_v57, -inf }
 0x26c   :  { %v2282_v49 = vpop.f32.mrf.mxu1  ;;  %1374 = vmax.xlane.f32.xlu0 %v1373_v48  ;;  %v1125_v59 = vpop.f32.mrf.mxu0 }
 0x26d   :  { %v1376_v62 = vsel %vm1366_vm3, %v2778_v47, -inf }
 0x26e   :  { %v2277_v60 = vpop.f32.mrf.mxu0  ;;  %v1171_v61 = vpop.f32.mrf.mxu1 }
 0x270   :  { %v2283_v63 = vpop.f32.mrf.mxu1  ;;  %1377 = vmax.xlane.f32.xlu0 %v1376_v62  ;;  %v1214_v1 = vpop.f32.mrf.mxu0 }
 0x271   :  { %v1362_v2 = vmul.f32 0.5, %v1214_v1 }
 0x272   :  { %v2288_v3 = vpop.f32.mrf.mxu0  ;;  %v1260_v4 = vpop.f32.mrf.mxu1 }
 0x273   :  { %v2784_v5 = vmul.f32 0.5, %v1260_v4  ;;  %v1379_v6 = vsel %vm1366_vm3, %v1362_v2, -inf }
 0x274   :  { %v2294_v7 = vpop.f32.mrf.mxu1  ;;  %1380 = vmax.xlane.f32.xlu1 %v1379_v6  ;;  %v1217_v8 = vpop.f32.mrf.mxu0 }
 0x275   :  { %v1382_v9 = vsel %vm1366_vm3, %v2784_v5, -inf }
 0x276   :  { %v1263_v10 = vpop.f32.mrf.mxu1  ;;  %1383 = vmax.xlane.f32.xlu0 %v1382_v9  ;;  %v2289_v11 = vpop.f32.mrf.mxu0 }
 0x278   :  { %v2295_v12 = vpop.f32.mrf.mxu1  ;;  %v1306_v13 = vpop.f32.mrf.mxu0 }
 0x279   :  { %v1364_v14 = vmul.f32 0.5, %v1306_v13  ;;  %v769_v13 = vcombine.low %v2795_v26, %v2797_v27 }
 0x27a   :  { %v2300_v15 = vpop.f32.mrf.mxu0  ;;  %v1352_v16 = vpop.f32.mrf.mxu1 }
 0x27b   :  { %v1365_v17 = vmul.f32 0.5, %v1352_v16  ;;  %v1385_v18 = vsel %vm1366_vm3, %v1364_v14, -inf  ;;  %v770_v15 = vcombine.high %v2795_v26, %v2797_v27  ;;  %v768_v26 = vrot.slane %v754_v35, %v2637_v34 }
 0x27c   :  { %v2306_v19 = vpop.f32.mrf.mxu1  ;;  %1386 = vmax.xlane.f32.xlu1 %v1385_v18  ;;  %v1309_v20 = vpop.f32.mrf.mxu0 }
 0x27d   :  { %v1388_v21 = vsel %vm1366_vm3, %v1365_v17, -inf }
 0x27e   :  { %v1355_v23 = vpop.f32.mrf.mxu1  ;;  %1389 = vmax.xlane.f32.xlu0 %v1388_v21  ;;  %v2301_v24 = vpop.f32.mrf.mxu0  ;;  %v761_v21 = vrot.slane %v753_v33, %v2637_v34 }
 0x27f   :  { %v784_v23 = vrot.slane %v770_v15, %v2637_v34 }
 0x280   :  { %v2307_v25 = vpop.f32.mrf.mxu1 }
 0x28d   :  { %739 = vrot.lane.b32.xlu1 %v2643_v41, %s2541_s3 }
 0x294   :  { %737 = vrot.lane.b32.xlu0 %v2634_v30, %s2541_s3 }
 0x2ed   :  { %v1369_v28 = vpop.xlane.xlu0 %1368 }
 0x2ee   :  { %v1391_v29 = vsub.f32 %v1358_v37, %v1369_v28 }
 0x2ef   :  { %v1372_v36 = vpop.xlane.xlu1 %1371 }
 0x2f0   :  { %v1399_v38 = vmul.f32 1.442695, %v1391_v29  ;;  %v1392_v39 = vsub.f32 %v1359_v42, %v1372_v36 }
 0x2f2   :  { %2386 = vpow2.f32 %v1399_v38  ;;  %v1401_v43 = vmul.f32 1.442695, %v1392_v39 }
 0x2f4   :  { %2388 = vpow2.f32 %v1401_v43  ;;  %v833_v43 = vcombine.low %v768_v26, %v784_v23 }
 0x2f5   :  { %v1375_v37 = vpop.xlane.xlu0 %1374 }
 0x2f6   :  { %v1393_v55 = vsub.f32 %v2776_v57, %v1375_v37 }
 0x2f8   :  { %v1403_v46 = vmul.f32 1.442695, %v1393_v55 }
 0x2f9   :  { %v1378_v42 = vpop.xlane.xlu0 %1377 }
 0x2fa   :  { %v1394_v53 = vsub.f32 %v2778_v47, %v1378_v42 }
 0x2fc   :  { %v1405_v56 = vmul.f32 1.442695, %v1394_v53 }
 0x2fd   :  { %v1381_v52 = vpop.xlane.xlu1 %1380 }
 0x2fe   :  { %v1395_v48 = vsub.f32 %v1362_v2, %v1381_v52  ;;  %2390 = vpow2.f32 %v1405_v56  ;;  %v841_v56 = vrot.slane %v833_v43, %v2648_v44 }
 0x2ff   :  { %v2799_v45 = vpop.eup %2386  ;;  %v1384_v49 = vpop.xlane.xlu0 %1383  ;;  %2392 = vpow2.f32 %v1403_v46 }
 0x300   :  { %v1415_v41 = vsel %vm1366_vm3, %v2799_v45, 0.0  ;;  %v1396_v60 = vsub.f32 %v2784_v5, %v1384_v49 }
 0x301   :  { %v2803_v50 = vpop.eup %2388  ;;  %1416 = vadd.xlane.f32.xlu1 %v1415_v41  ;;  %v834_v41 = vcombine.high %v768_v26, %v784_v23 }
 0x302   :  { %v1418_v30 = vsel %vm1366_vm3, %v2803_v50, 0.0 }
 0x303   :  { %1419 = vadd.xlane.f32.xlu0 %v1418_v30 }
 0x305   :  { %v1387_v54 = vpop.xlane.xlu1 %1386 }
 0x306   :  { %v1397_v58 = vsub.f32 %v1364_v14, %v1387_v54 }
 0x307   :  { %v1390_v61 = vpop.xlane.xlu0 %1389 }
 0x308   :  { %v1411_v59 = vmul.f32 1.442695, %v1397_v58  ;;  %v1398_v62 = vsub.f32 %v1365_v17, %v1390_v61  ;;  %v777_v17 = vrot.slane %v769_v13, %v2637_v34  ;;  %v848_v58 = vrot.slane %v834_v41, %v2648_v44 }
 0x309   :  { %v740_v11 = vpop.permute.xlu1 %739 }
 0x30a   :  { %2394 = vpow2.f32 %v1411_v59  ;;  %v1413_v47 = vmul.f32 1.442695, %v1398_v62  ;;  %v817_v27 = vcombine.low %v761_v21, %v777_v17  ;;  %v818_v29 = vcombine.high %v761_v21, %v777_v17 }
 0x30b   :  { %v2814_v63 = vpop.eup %2390  ;;  %v738_v12 = vpop.permute.xlu0 %737 }
 0x30c   :  { %v2816_v57 = vpop.eup %2392  ;;  %v1424_v1 = vsel %vm1366_vm3, %v2814_v63, 0.0  ;;  %v825_v31 = vrot.slane %v817_v27, %v2648_v44  ;;  %v832_v32 = vrot.slane %v818_v29, %v2648_v44 }
 0x30d   :  { %v1421_v3 = vsel %vm1366_vm3, %v2816_v57, 0.0 }
 0x312   :  { %743 = vrot.lane.b32.xlu1 %v2654_v51, %s2541_s3  ;;  %v1407_v51 = vmul.f32 1.442695, %v1395_v48 }
 0x314   :  { %2396 = vpow2.f32 %v1407_v51 }
 0x317   :  { %v2820_v2 = vpop.eup %2394 }
 0x318   :  { %v1433_v5 = vsel %vm1366_vm3, %v2820_v2, 0.0 }
 0x319   :  { %741 = vrot.lane.b32.xlu0 %v2641_v40, %s2541_s3  ;;  %v1409_v40 = vmul.f32 1.442695, %v1396_v60 }
 0x31b   :  { %2398 = vpow2.f32 %v1409_v40 }
 0x31c   :  { %2400 = vpow2.f32 %v1413_v47 }
 0x321   :  { %v2824_v4 = vpop.eup %2396 }
 0x322   :  { %v1427_v6 = vsel %vm1366_vm3, %v2824_v4, 0.0 }
 0x328   :  { %v2830_v7 = vpop.eup %2398 }
 0x329   :  { %v1430_v8 = vsel %vm1366_vm3, %v2830_v7, 0.0  ;;  %v2834_v9 = vpop.eup %2400 }
 0x32a   :  { %v1436_v10 = vsel %vm1366_vm3, %v2834_v9, 0.0 }
 0x336   :  { %1425 = vadd.xlane.f32.xlu1 %v1424_v1 }
 0x338   :  { %1422 = vadd.xlane.f32.xlu0 %v1421_v3 }
 0x33a   :  { %1434 = vadd.xlane.f32.xlu1 %v1433_v5 }
 0x33c   :  { %1428 = vadd.xlane.f32.xlu0 %v1427_v6 }
 0x340   :  { %1431 = vadd.xlane.f32.xlu0 %v1430_v8 }
 0x344   :  { %1437 = vadd.xlane.f32.xlu0 %v1436_v10 }
 0x38a   :  { %v1417_v14 = vpop.xlane.xlu1 %1416 }
 0x38b   :  { %2402 = vrcp.f32 %v1417_v14 }
 0x38c   :  { %v1420_v16 = vpop.xlane.xlu0 %1419 }
 0x38d   :  { %2404 = vrcp.f32 %v1420_v16 }
 0x38e   :  { %v744_v18 = vpop.permute.xlu1 %743 }
 0x38f   :  { %v801_v19 = vcombine.low %v740_v11, %v744_v18  ;;  %v802_v20 = vcombine.high %v740_v11, %v744_v18 }
 0x390   :  { %v742_v24 = vpop.permute.xlu0 %741 }
 0x391   :  { %v785_v25 = vcombine.low %v738_v12, %v742_v24  ;;  %v786_v28 = vcombine.high %v738_v12, %v742_v24  ;;  %v809_v36 = vrot.slane %v801_v19, %v2637_v34  ;;  %v816_v38 = vrot.slane %v802_v20, %v2637_v34 }
 0x393   :  { %v793_v33 = vrot.slane %v785_v25, %v2637_v34  ;;  %v800_v39 = vrot.slane %v786_v28, %v2637_v34 }
 0x395   :  { %v849_v30 = vcombine.low %v793_v33, %v809_v36  ;;  %v850_v37 = vcombine.high %v793_v33, %v809_v36  ;;  %v865_v42 = vcombine.low %v800_v39, %v816_v38  ;;  %v866_v52 = vcombine.high %v800_v39, %v816_v38 }
 0x397   :  { %v857_v35 = vrot.slane %v849_v30, %v2648_v44  ;;  %v864_v53 = vrot.slane %v850_v37, %v2648_v44  ;;  %v873_v54 = vrot.slane %v865_v42, %v2648_v44  ;;  %v880_v55 = vrot.slane %v866_v52, %v2648_v44 }
 0x398   :  { %v2403_v5 = vpop.eup %2402 }
 0x399   :  { %v881_v46 = vcombine.low %v825_v31, %v857_v35  ;;  %v882_v48 = vcombine.high %v825_v31, %v857_v35  ;;  %v883_v49 = vcombine.low %v832_v32, %v864_v53  ;;  %v884_v59 = vcombine.high %v832_v32, %v864_v53 }
 0x39a   :  { %v885_v51 = vcombine.low %v841_v56, %v873_v54  ;;  %v886_v60 = vcombine.high %v841_v56, %v873_v54  ;;  %v887_v61 = vcombine.low %v848_v58, %v880_v55  ;;  %v888_v40 = vcombine.high %v848_v58, %v880_v55  ;;  %v2405_v12 = vpop.eup %2404 }
 0x39b   :  { %v1447_v21 = vmul.f32 %v2403_v5, %v2799_v45  ;;  %v1448_v23 = vmul.f32 %v2405_v12, %v2803_v50 }
 0x39c   :  { %v2178_v62 = vpack.c.bf16 %v885_v51, %v881_v46  ;;  %v2179_v47 = vpack.c.bf16 %v887_v61, %v883_v49  ;;  %v2180_v1 = vpack.c.bf16 %v886_v60, %v882_v48  ;;  %v2181_v3 = vpack.c.bf16 %v888_v40, %v884_v59 }
 0x39d   :  { %v1455_v42 = vpack.c.bf16 %v1447_v21, %v1447_v21  ;;  %v1456_v53 = vpack.c.bf16 %v1448_v23, %v1448_v23 }
 0x39e   :  { %v904_v6 = vrot.slane %v2178_v62, %v2637_v34  ;;  %v912_v8 = vrot.slane %v2179_v47, %v2637_v34  ;;  %v938_v10 = vrot.slane %v2180_v1, %v2637_v34  ;;  %v946_v11 = vrot.slane %v2181_v3, %v2637_v34 }
 0x3a0   :  { %v913_v13 = vcombine.low %v904_v6, %v912_v8  ;;  %v947_v14 = vcombine.low %v938_v10, %v946_v11  ;;  %v914_v15 = vcombine.high %v904_v6, %v912_v8  ;;  %v948_v16 = vcombine.high %v938_v10, %v946_v11 }
 0x3a2   :  { %v921_v17 = vrot.slane %v913_v13, %v2648_v44  ;;  %v955_v18 = vrot.slane %v947_v14, %v2648_v44  ;;  %v2871_v19 = vrot.slane %v914_v15, %v2648_v44  ;;  %v2874_v20 = vrot.slane %v948_v16, %v2648_v44 }
 0x3a4   :  { %v967_v24 = vpack.i.b16 %v955_v18, %v921_v17  ;;  %v968_v25 = vshrl.u32 %v921_v17, 16  ;;  %v969_v28 = vshrl.u32 %v955_v18, 16  ;;  %v929_v26 = vcombine.high %v921_v17, %v2544_v22 }
 0x3a5   :  { %v963_v27 = vcombine.high %v955_v18, %v2544_v22  ;;  %v980_v29 = vshrl.u32 %v2871_v19, 16  ;;  %v981_v36 = vshrl.u32 %v2874_v20, 16  ;;  %v979_v38 = vpack.i.b16 %v2874_v20, %v2871_v19 }
 0x3a6   :  { %v1468_v33 = vsel %vm1466_vm4, %v967_v24, 0  ;;  %v970_v39 = vpack.i.b16 %v969_v28, %v968_v25  ;;  %v974_v45 = vshrl.u32 %v929_v26, 16  ;;  %v2887_v50 = vcombine.high %v2871_v19, %v2544_v22 }
 0x3a7   :  { %2309 = vmatpush3.bf16.msra.mxu0 %v1468_v33  ;;  %v973_v43 = vpack.i.b16 %v963_v27, %v929_v26  ;;  %v975_v41 = vshrl.u32 %v963_v27, 16  ;;  %v982_v30 = vpack.i.b16 %v981_v36, %v980_v29  ;;  %v964_v52 = vcombine.high %v2874_v20, %v2544_v22 }
 0x3a8   :  { %v1514_v37 = vsel %vm1466_vm4, %v970_v39, 0  ;;  %2320 = vmatprep.subr.bf16.mxu0 %v2532_v0  ;;  %v986_v31 = vshrl.u32 %v2887_v50, 16  ;;  %v1652_v6 = vsel %vm1466_vm4, %v979_v38, 0 }
 0x3a9   :  { %2315 = vmatpush3.bf16.msra.mxu1 %v1514_v37  ;;  %v976_v32 = vpack.i.b16 %v975_v41, %v974_v45  ;;  %v1560_v35 = vsel %vm1466_vm4, %v973_v43, 0  ;;  %v985_v54 = vpack.i.b16 %v964_v52, %v2887_v50  ;;  %v987_v55 = vshrl.u32 %v964_v52, 16 }
 0x3aa   :  { %2311 = vmatmul.mubr.msk.bf16.vlgmr.msra.gmra.mxu0 %vm1366_vm3, %v1455_v42  ;;  %2326 = vmatprep.subr.bf16.mxu1 %v2532_v0  ;;  %v1698_v1 = vsel %vm1466_vm4, %v982_v30, 0 }
 0x3ab   :  { %2321 = vmatpush3.bf16.msra.mxu0 %v1560_v35  ;;  %2322 = vmatprep.mubr.msk.bf16.mxu0 %vm2533_vm0, %v2532_v0  ;;  %v1606_v22 = vsel %vm1466_vm4, %v976_v32, 0  ;;  %v988_v56 = vpack.i.b16 %v987_v55, %v986_v31  ;;  %v1744_v14 = vsel %vm1466_vm4, %v985_v54, 0 }
 0x3ac   :  { %2317 = vmatmul.mubr.msk.bf16.vlgmr.msra.gmra.mxu1 %vm1366_vm3, %v1456_v53  ;;  %2332 = vmatprep.subr.bf16.mxu0 %v2532_v0 }
 0x3ad   :  { %2327 = vmatpush3.bf16.msra.mxu1 %v1606_v22  ;;  %2328 = vmatprep.mubr.msk.bf16.mxu1 %vm2533_vm0, %v2532_v0  ;;  %v1790_v15 = vsel %vm1466_vm4, %v988_v56, 0 }
 0x3ae   :  { %2338 = vmatprep.subr.bf16.mxu1 %v2532_v0 }
 0x3bf   :  { %v1426_v58 = vpop.xlane.xlu1 %1425 }
 0x3c0   :  { %2406 = vrcp.f32 %v1426_v58 }
 0x3c1   :  { %v1423_v46 = vpop.xlane.xlu0 %1422 }
 0x3c2   :  { %2408 = vrcp.f32 %v1423_v46 }
 0x3c3   :  { %v1435_v59 = vpop.xlane.xlu1 %1434 }
 0x3c5   :  { %v1429_v48 = vpop.xlane.xlu0 %1428 }
 0x3c6   :  { %2410 = vrcp.f32 %v1429_v48 }
 0x3c9   :  { %v1432_v49 = vpop.xlane.xlu0 %1431 }
 0x3ca   :  { %2412 = vrcp.f32 %v1432_v49 }
 0x3cb   :  { %2414 = vrcp.f32 %v1435_v59 }
 0x3cd   :  { %v2407_v51 = vpop.eup %2406  ;;  %v1438_v60 = vpop.xlane.xlu0 %1437 }
 0x3ce   :  { %2416 = vrcp.f32 %v1438_v60  ;;  %v1450_v61 = vmul.f32 %v2407_v51, %v2814_v63 }
 0x3cf   :  { %v2409_v40 = vpop.eup %2408 }
 0x3d0   :  { %v1458_v62 = vpack.c.bf16 %v1450_v61, %v1450_v61  ;;  %v1449_v47 = vmul.f32 %v2409_v40, %v2816_v57 }
 0x3d2   :  { %2329 = vmatmul.mubr.msk.bf16.vlgmr.msra.gmra.mxu1 %vm1366_vm3, %v1458_v62  ;;  %v1457_v3 = vpack.c.bf16 %v1449_v47, %v1449_v47 }
 0x3d3   :  { %v2411_v5 = vpop.eup %2410  ;;  %2339 = vmatpush3.bf16.msra.mxu1 %v1698_v1  ;;  %2340 = vmatprep.mubr.msk.bf16.mxu1 %vm2533_vm0, %v2532_v0 }
 0x3d4   :  { %2323 = vmatmul.mubr.msk.bf16.vlgmr.msra.gmra.mxu0 %vm1366_vm3, %v1457_v3  ;;  %2350 = vmatprep.subr.bf16.mxu1 %v2532_v0  ;;  %v1451_v63 = vmul.f32 %v2411_v5, %v2824_v4 }
 0x3d5   :  { %2333 = vmatpush3.bf16.msra.mxu0 %v1652_v6  ;;  %2334 = vmatprep.mubr.msk.bf16.mxu0 %vm2533_vm0, %v2532_v0 }
 0x3d6   :  { %2344 = vmatprep.subr.bf16.mxu0 %v2532_v0  ;;  %v1459_v11 = vpack.c.bf16 %v1451_v63, %v1451_v63 }
 0x3d7   :  { %v2413_v57 = vpop.eup %2412 }
 0x3d8   :  { %v1452_v8 = vmul.f32 %v2413_v57, %v2830_v7  ;;  %v2415_v10 = vpop.eup %2414 }
 0x3d9   :  { %v1453_v4 = vmul.f32 %v2415_v10, %v2820_v2 }
 0x3da   :  { %v1460_v12 = vpack.c.bf16 %v1452_v8, %v1452_v8 }
 0x3db   :  { %v2417_v13 = vpop.eup %2416  ;;  %v1461_v16 = vpack.c.bf16 %v1453_v4, %v1453_v4 }
 0x3dc   :  { %2335 = vmatmul.mubr.msk.bf16.vlgmr.msra.gmra.mxu0 %vm1366_vm3, %v1459_v11  ;;  %2341 = vmatmul.mubr.msk.bf16.vlgmr.msra.gmra.mxu1 %vm1366_vm3, %v1460_v12  ;;  %v1454_v7 = vmul.f32 %v2417_v13, %v2834_v9 }
 0x3dd   :  { %2345 = vmatpush3.bf16.msra.mxu0 %v1744_v14  ;;  %2351 = vmatpush3.bf16.msra.mxu1 %v1790_v15 }
 0x3de   :  { %2346 = vmatprep.mubr.msk.bf16.mxu0 %vm2533_vm0, %v2532_v0  ;;  %2352 = vmatprep.mubr.msk.bf16.mxu1 %vm2533_vm0, %v2532_v0  ;;  %v1462_v17 = vpack.c.bf16 %v1454_v7, %v1454_v7 }
 0x3e4   :  { %2347 = vmatmul.mubr.msk.bf16.vlgmr.msra.gmra.mxu0 %vm1366_vm3, %v1461_v16  ;;  %2353 = vmatmul.mubr.msk.bf16.vlgmr.msra.gmra.mxu1 %vm1366_vm3, %v1462_v17 }
 0x46a   :  { %v1504_v18 = vpop.f32.mrf.mxu0 }
 0x46c   :  { %v2312_v19 = vpop.f32.mrf.mxu0  ;;  %v1550_v20 = vpop.f32.mrf.mxu1 }
 0x46e   :  { %v1507_v21 = vpop.f32.mrf.mxu0  ;;  %v2318_v23 = vpop.f32.mrf.mxu1 }
 0x470   :  { %v2313_v24 = vpop.f32.mrf.mxu0  ;;  %v1553_v25 = vpop.f32.mrf.mxu1 }
 0x472   :  { %v2319_v28 = vpop.f32.mrf.mxu1 }
 0x492   :  { %v1642_v26 = vpop.f32.mrf.mxu1 }
 0x493   :  { %v1848_v0 = vcombine.low %v1550_v20, %v1642_v26  ;;  %v1849_v27 = vcombine.high %v1550_v20, %v1642_v26 }
 0x494   :  { %v1596_v2 = vpop.f32.mrf.mxu0  ;;  %v2330_v29 = vpop.f32.mrf.mxu1 }
 0x495   :  { %v1832_v9 = vcombine.low %v1504_v18, %v1596_v2  ;;  %v1833_v36 = vcombine.high %v1504_v18, %v1596_v2  ;;  %v1856_v39 = vrot.slane %v1848_v0, %v2637_v34  ;;  %v1863_v45 = vrot.slane %v1849_v27, %v2637_v34 }
 0x496   :  { %v2324_v38 = vpop.f32.mrf.mxu0  ;;  %v1645_v33 = vpop.f32.mrf.mxu1 }
 0x497   :  { %v1840_v50 = vrot.slane %v1832_v9, %v2637_v34  ;;  %v1847_v43 = vrot.slane %v1833_v36, %v2637_v34 }
 0x498   :  { %v1599_v41 = vpop.f32.mrf.mxu0  ;;  %v2331_v30 = vpop.f32.mrf.mxu1 }
 0x499   :  { %v1896_v37 = vcombine.low %v1840_v50, %v1856_v39  ;;  %v1897_v42 = vcombine.high %v1840_v50, %v1856_v39  ;;  %v1912_v52 = vcombine.low %v1847_v43, %v1863_v45  ;;  %v1913_v31 = vcombine.high %v1847_v43, %v1863_v45 }
 0x49a   :  { %v2325_v32 = vpop.f32.mrf.mxu0 }
 0x49b   :  { %v1904_v35 = vrot.slane %v1896_v37, %v2648_v44  ;;  %v1911_v53 = vrot.slane %v1897_v42, %v2648_v44  ;;  %v1920_v54 = vrot.slane %v1912_v52, %v2648_v44  ;;  %v1927_v55 = vrot.slane %v1913_v31, %v2648_v44 }
 0x49c   :  { %v1688_v22 = vpop.f32.mrf.mxu0  ;;  %v1734_v56 = vpop.f32.mrf.mxu1 }
 0x49d   :  { %v2198_v58 = vcombine.low %v1904_v35, %v1911_v53  ;;  %v2200_v46 = vcombine.high %v1904_v35, %v1911_v53  ;;  %v2202_v48 = vcombine.low %v1920_v54, %v1927_v55  ;;  %v2204_v49 = vcombine.high %v1920_v54, %v1927_v55 }
 0x49e   :  { %v2336_v59 = vpop.f32.mrf.mxu0  ;;  %v2342_v51 = vpop.f32.mrf.mxu1 }
 0x49f   :  { %v1976_v60 = vrot.slane %v2198_v58, %v2637_v34  ;;  %v1992_v61 = vrot.slane %v2200_v46, %v2637_v34  ;;  %v2008_v40 = vrot.slane %v2202_v48, %v2637_v34  ;;  %v2024_v62 = vrot.slane %v2204_v49, %v2637_v34 }
 0x4a0   :  { %v1691_v47 = vpop.f32.mrf.mxu0  ;;  %v1737_v1 = vpop.f32.mrf.mxu1 }
 0x4a1   :  { %v2033_v3 = vcombine.high %v1976_v60, %v1992_v61  ;;  %v2065_v5 = vcombine.high %v2008_v40, %v2024_v62  ;;  %v2032_v6 = vcombine.low %v1976_v60, %v1992_v61  ;;  %v2064_v63 = vcombine.low %v2008_v40, %v2024_v62 }
 0x4a2   :  { %v2337_v57 = vpop.f32.mrf.mxu0  ;;  %v2343_v8 = vpop.f32.mrf.mxu1 }
 0x4a3   :  { %v2047_v10 = vrot.slane %v2033_v3, %v2648_v44  ;;  %v2079_v11 = vrot.slane %v2065_v5, %v2648_v44  ;;  %v2947_v12 = vrot.slane %v2032_v6, %v2648_v44  ;;  %v2950_v13 = vrot.slane %v2064_v63, %v2648_v44 }
 0x4a4   :  { %v1780_v14 = vpop.f32.mrf.mxu0  ;;  %v1826_v15 = vpop.f32.mrf.mxu1 }
 0x4a5   :  { %v1864_v4 = vcombine.low %v1688_v22, %v1780_v14  ;;  %v1865_v7 = vcombine.high %v1688_v22, %v1780_v14  ;;  %v1880_v16 = vcombine.low %v1734_v56, %v1826_v15  ;;  %v1881_v17 = vcombine.high %v1734_v56, %v1826_v15 }
 0x4a6   :  { %v2348_v18 = vpop.f32.mrf.mxu0  ;;  %v2354_v19 = vpop.f32.mrf.mxu1  ;;  %v2098_v20 = vcombine.low %v2047_v10, %v2079_v11  ;;  %v2097_v21 = vcombine.high %v2947_v12, %v2950_v13  ;;  %v2096_v23 = vcombine.low %v2947_v12, %v2950_v13  ;;  %v2099_v39 = vcombine.high %v2047_v10, %v2079_v11 }
 0x4a7   :  { %v1872_v24 = vrot.slane %v1864_v4, %v2637_v34  ;;  %v1879_v25 = vrot.slane %v1865_v7, %v2637_v34  ;;  %v1888_v28 = vrot.slane %v1880_v16, %v2637_v34  ;;  %v1895_v26 = vrot.slane %v1881_v17, %v2637_v34 }
 0x4a8   :  { %2109 = vrot.lane.b32.xlu0 %v2098_v20, %s2545_s25  ;;  %2105 = vrot.lane.b32.xlu1 %v2097_v21, %s2530_s10  ;;  %v1783_v0 = vpop.f32.mrf.mxu0  ;;  %v1829_v27 = vpop.f32.mrf.mxu1 }
 0x4a9   :  { %v1928_v2 = vcombine.low %v1872_v24, %v1888_v28  ;;  %v1929_v29 = vcombine.high %v1872_v24, %v1888_v28  ;;  %v1944_v9 = vcombine.low %v1879_v25, %v1895_v26  ;;  %v1945_v36 = vcombine.high %v1879_v25, %v1895_v26 }
 0x4aa   :  { %v2349_v38 = vpop.f32.mrf.mxu0  ;;  %v2355_v33 = vpop.f32.mrf.mxu1 }
 0x4ab   :  { %v1936_v45 = vrot.slane %v1928_v2, %v2648_v44  ;;  %v1943_v50 = vrot.slane %v1929_v29, %v2648_v44  ;;  %v1952_v43 = vrot.slane %v1944_v9, %v2648_v44  ;;  %v1959_v41 = vrot.slane %v1945_v36, %v2648_v44 }
 0x4ac   :  { %2113 = vrot.lane.b32.xlu1 %v2099_v39, %s2546_s26 }
 0x4ad   :  { %v2199_v30 = vcombine.low %v1936_v45, %v1943_v50  ;;  %v2201_v37 = vcombine.high %v1936_v45, %v1943_v50  ;;  %v2203_v42 = vcombine.low %v1952_v43, %v1959_v41  ;;  %v2205_v52 = vcombine.high %v1952_v43, %v1959_v41 }
 0x4af   :  { %v1983_v31 = vrot.slane %v2199_v30, %v2637_v34  ;;  %v1999_v32 = vrot.slane %v2201_v37, %v2637_v34  ;;  %v2015_v35 = vrot.slane %v2203_v42, %v2637_v34  ;;  %v2031_v53 = vrot.slane %v2205_v52, %v2637_v34 }
 0x4b1   :  { %v2048_v54 = vcombine.low %v1983_v31, %v1999_v32  ;;  %v2080_v55 = vcombine.low %v2015_v35, %v2031_v53  ;;  %v2049_v22 = vcombine.high %v1983_v31, %v1999_v32  ;;  %v2081_v56 = vcombine.high %v2015_v35, %v2031_v53 }
 0x4b3   :  { %v2056_v58 = vrot.slane %v2048_v54, %v2648_v44  ;;  %v2088_v46 = vrot.slane %v2080_v55, %v2648_v44  ;;  %v2063_v59 = vrot.slane %v2049_v22, %v2648_v44  ;;  %v2095_v51 = vrot.slane %v2081_v56, %v2648_v44 }
 0x4b5   :  { %v2101_v48 = vcombine.high %v2056_v58, %v2088_v46  ;;  %v2100_v49 = vcombine.low %v2056_v58, %v2088_v46  ;;  %v2103_v60 = vcombine.high %v2063_v59, %v2095_v51  ;;  %v2102_v34 = vcombine.low %v2063_v59, %v2095_v51 }
 0x4b7   :  { %2121 = vrot.lane.b32.xlu0 %v2101_v48, %s2547_s27  ;;  %2117 = vrot.lane.b32.xlu1 %v2100_v49, %s2548_s28 }
 0x4bb   :  { %2129 = vrot.lane.b32.xlu0 %v2103_v60, %s2549_s29  ;;  %2125 = vrot.lane.b32.xlu1 %v2102_v34, %s2550_s30 }
 0x51a   :  { %v2106_v61 = vpop.permute.xlu1 %2105  ;;  %v2110_v40 = vpop.permute.xlu0 %2109 }
 0x51b   :  { %v2132_v62 = vsel %vm989_vm2, %v2096_v23, %v2106_v61 }
 0x51c   :  { %v2133_v1 = vsel %vm1366_vm3, %v2132_v62, %v2110_v40 }
 0x51e   :  { %v2114_v47 = vpop.permute.xlu1 %2113 }
 0x51f   :  { %v2135_v44 = vsel %vm2134_vm5, %v2133_v1, %v2114_v47 }
 0x529   :  { %v2122_v3 = vpop.permute.xlu0 %2121  ;;  %v2118_v5 = vpop.permute.xlu1 %2117 }
 0x52a   :  { %v2137_v6 = vsel %vm2136_vm6, %v2135_v44, %v2118_v5 }
 0x52b   :  { %v2139_v57 = vsel %vm2138_vm7, %v2137_v6, %v2122_v3 }
 0x52d   :  { %v2130_v63 = vpop.permute.xlu0 %2129  ;;  %v2126_v8 = vpop.permute.xlu1 %2125 }
 0x52e   :  { %v2141_v10 = vsel %vm2140_vm8, %v2139_v57, %v2126_v8 }
 0x52f   :  { %v2143_v11 = vsel %vm2142_vm9, %v2141_v10, %v2130_v63 }
 0x530   :  { %2144 = vst.msk [vmem:[#allocation10] sm:$0xff] %vm101_vm1, %v2143_v11 }
 0x531   :  { %2509 = shalt.err (!%p2506_p10)
}
 0x532   :  { %2154 = dma.vmem_to_hbm [thread:$0]  %s2152_s8, 128, %s2985_s6, [#allocation4]  }
 0x533   :  { %2524 = dma.done.wait [#allocation4], 128  }
 0x534   :  { %2525 = vsyncadd [#allocation4], 4294967168 }
 0x535   :  { %2158 = vsyncpa [#allocation3], 1 }
 0x536   :  { %2159 = vsyncpa [#allocation6], 1 }
 0x537   :  { %2160 = vsyncpa [#allocation9], 1 }
 0x538   :  { %2161 = vsyncpa [#allocation4], 1 }

</bundles_post_ra>
